<compile_context>
chip_gen: v6e
topology: v6e:2x2x1
jax: 0.10.0
libtpu: 0.0.40
codegen_flags: <defaults>
</compile_context>

<pallas_src>
import jax
import jax.numpy as jnp
from jax.experimental import pallas as pl
from jax.experimental.pallas import tpu as pltpu


def _round_up(x, m):
    return ((x + m - 1) // m) * m


def intent_head_kernel(x_ref, w1_ref, b1_ref, w2_ref, b2_ref, o_ref):
    # x_ref:  [TB, E]  (input dtype; cast to matmul dtype in-kernel, no extra
    #                   HBM pass in the wrapper)
    # w1_ref: [E, H]   b1_ref: [1, H]    (biases f32)
    # w2_ref: [H, Lp]  b2_ref: [1, Lp]
    # o_ref:  [TB, Lp] (lane-dense slab -> unmasked vst)
    x = x_ref[...].astype(w1_ref.dtype)
    h = jnp.dot(x, w1_ref[...], preferred_element_type=jnp.float32) + b1_ref[...]
    h = jnp.maximum(h, 0.0)                       # ReLU
    # Dropout(p=0.3) is identity in eval mode -> omitted.
    h = h.astype(w2_ref.dtype)
    logits = jnp.dot(h, w2_ref[...], preferred_element_type=jnp.float32) + b2_ref[...]
    o_ref[...] = logits.astype(o_ref.dtype)


def intent_classifier_forward(embeddings, w1, b1, w2, b2, *,
                              batch_tile=2048,
                              compute_dtype=jnp.bfloat16,
                              out_dtype=jnp.bfloat16):
    """relu(embeddings @ w1 + b1) @ w2 + b2, computed with a Pallas TPU kernel.

    embeddings: [B, E]; w1: [E, H]; b1: [1, H]; w2: [H, L]; b2: [1, L].
    Returns logits [B, L] in `out_dtype` (bf16 by default; upcast outside if
    the consumer needs f32 - it is only [B, L] elements).
    """
    B, E = embeddings.shape
    E2, H = w1.shape
    H2, L = w2.shape
    assert E == E2 and H == H2 and b1.shape == (1, H) and b2.shape == (1, L)

    # ---- Lane-dense output: pad num_labels up to a multiple of 128. ----
    # (Weights/biases are tiny; this pad is a one-time negligible cost.)
    L_pad = _round_up(L, 128)
    if L_pad != L:
        w2 = jnp.pad(w2, ((0, 0), (0, L_pad - L)))
        b2 = jnp.pad(b2, ((0, 0), (0, L_pad - L)))

    # ---- Balanced batch tiles; no wrapper-side padding of the embeddings. ----
    # n grid steps, each of `tile` rows (multiple of 8).  The ragged last block
    # (<= tile-1 rows) is handled by Pallas: OOB rows read garbage and their
    # output rows are never written back, and rows are independent here.
    n = max(1, pl.cdiv(B, int(batch_tile)))
    if B >= 1024:
        # v7x has 2 TensorCores: make sure the "parallel" batch axis has at
        # least 2 grid steps so both cores get work.  No effect on v5e/v6e.
        n = max(n, 2)
    tile = _round_up(pl.cdiv(B, n), 8)
    grid = (pl.cdiv(B, tile),)

    # Weights in compute dtype (tiny one-time casts); biases stay f32 and are
    # added to the f32 MXU accumulator inside the kernel.
    w1c = w1.astype(compute_dtype)
    w2c = w2.astype(compute_dtype)
    b1f = b1.astype(jnp.float32)
    b2f = b2.astype(jnp.float32)

    emb_isz = jnp.dtype(embeddings.dtype).itemsize
    c_isz = jnp.dtype(compute_dtype).itemsize
    o_isz = jnp.dtype(out_dtype).itemsize
    cost = pl.CostEstimate(
        flops=2 * B * (E * H + H * L_pad),
        transcendentals=0,
        bytes_accessed=(B * E * emb_isz             # embeddings stream
                        + E * H * c_isz             # W1
                        + H * L_pad * c_isz         # W2 (padded)
                        + (H + L_pad) * 4           # biases
                        + B * L_pad * o_isz),       # logits slab out
    )

    out_padded = pl.pallas_call(
        intent_head_kernel,
        out_shape=jax.ShapeDtypeStruct((B, L_pad), out_dtype),
        grid_spec=pltpu.PrefetchScalarGridSpec(
            num_scalar_prefetch=0,
            grid=grid,
            in_specs=[
                pl.BlockSpec((tile, E), lambda i: (i, 0)),    # embeddings tile
                pl.BlockSpec((E, H), lambda i: (0, 0)),       # W1 (resident)
                pl.BlockSpec((1, H), lambda i: (0, 0)),       # b1
                pl.BlockSpec((H, L_pad), lambda i: (0, 0)),   # W2 (padded, resident)
                pl.BlockSpec((1, L_pad), lambda i: (0, 0)),   # b2 (padded)
            ],
            out_specs=pl.BlockSpec((tile, L_pad), lambda i: (i, 0)),
        ),
        compiler_params=pltpu.CompilerParams(
            # Batch axis is embarrassingly parallel -> megacore / 2xTC on v7x.
            dimension_semantics=("parallel",),
        ),
        cost_estimate=cost,
    )(embeddings, w1c, b1f, w2c, b2f)

    # Slice off the label-lane padding.  NOTE: let this fuse into the consumer
    # (argmax/softmax/loss); slice BEFORE any softmax since padded lanes are 0.
    return out_padded[:, :L]


def reference_forward(embeddings, w1, b1, w2, b2):
    h = jnp.maximum(embeddings @ w1 + b1, 0.0)
    return h @ w2 + b2


if __name__ == "__main__":
    # Shapes consistent with the module: embed_dim=128 (sentence embedding),
    # hidden_dim=256 (module default), num_labels=3.
    E, H, L = 128, 256, 3
    B_big, B = 40, 8

    key = jax.random.PRNGKey(0)
    k_emb, k_w1, k_b1, k_w2, k_b2 = jax.random.split(key, 5)

    emb_all = jax.random.normal(k_emb, (B_big, E), dtype=jnp.float32)
    w1 = jax.random.normal(k_w1, (E, H), dtype=jnp.float32) * (1.0 / jnp.sqrt(E))
    b1 = jax.random.normal(k_b1, (1, H), dtype=jnp.float32) * 0.01
    w2 = jax.random.normal(k_w2, (H, L), dtype=jnp.float32) * (1.0 / jnp.sqrt(H))
    b2 = jax.random.normal(k_b2, (1, L), dtype=jnp.float32) * 0.01

    embeddings = emb_all[:B]
    ref_all = reference_forward(emb_all, w1, b1, w2, b2)
    ref = ref_all[:B]

    # 1) Default path: bf16 operands + bf16 writeback, f32 accumulation.
    logits = intent_classifier_forward(embeddings, w1, b1, w2, b2)
    logits = jax.block_until_ready(logits)
    assert logits.shape == (B, L)
    assert logits.dtype == jnp.bfloat16
    assert jnp.allclose(logits.astype(jnp.float32), ref, atol=1e-1, rtol=1e-1)

    # 2) Full f32 path (exact check).
    logits_f32 = intent_classifier_forward(
        embeddings, w1, b1, w2, b2,
        compute_dtype=jnp.float32, out_dtype=jnp.float32)
    logits_f32 = jax.block_until_ready(logits_f32)
    assert logits_f32.shape == (B, L)
    assert jnp.allclose(logits_f32, ref, atol=1e-4, rtol=1e-4)

    # 3) Ragged batch (B=5, not a sublane multiple): handled by Pallas'
    #    padded last block, no wrapper-side jnp.pad / extra HBM pass.
    B_ragged = 5
    logits_r = intent_classifier_forward(
        emb_all[:B_ragged], w1, b1, w2, b2,
        compute_dtype=jnp.float32, out_dtype=jnp.float32)
    logits_r = jax.block_until_ready(logits_r)
    assert logits_r.shape == (B_ragged, L)
    assert jnp.allclose(logits_r, ref_all[:B_ragged], atol=1e-4, rtol=1e-4)

    # 4) Multi-step grid with balanced tiles + ragged last block
    #    (B=40, batch_tile=16 -> 3 steps of 16 rows, last block 8 rows padded).
    logits_multi = intent_classifier_forward(
        emb_all, w1, b1, w2, b2, batch_tile=16,
        compute_dtype=jnp.float32, out_dtype=jnp.float32)
    logits_multi = jax.block_until_ready(logits_multi)
    assert logits_multi.shape == (B_big, L)
    assert jnp.allclose(logits_multi, ref_all, atol=1e-4, rtol=1e-4)

    print("KERNEL_OK")
</pallas_src>

<mosaic_0001>
module attributes {stable_mosaic.version = 11 : i64} {
  func.func @intent_head_kernel(%arg0: i32, %arg1: memref<8x128xf32, #tpu.memory_space<vmem>>, %arg2: memref<128x256xbf16, #tpu.memory_space<vmem>>, %arg3: memref<1x256xf32, #tpu.memory_space<vmem>>, %arg4: memref<256x128xbf16, #tpu.memory_space<vmem>>, %arg5: memref<1x128xf32, #tpu.memory_space<vmem>>, %arg6: memref<8x128xbf16, #tpu.memory_space<vmem>>) attributes {dimension_semantics = [#tpu.dimension_semantics<parallel>], iteration_bounds = array<i64: 1>, scalar_prefetch = 0 : i64, scratch_operands = 0 : i64, tpu.core_type = #tpu.core_type<tc>, window_params = [{transform_indices = @transform_0, window_bounds = array<i64: 8, 128>}, {pipeline_mode = #tpu.pipeline_mode<synchronous>, transform_indices = @transform_1, window_bounds = array<i64: 128, 256>}, {pipeline_mode = #tpu.pipeline_mode<synchronous>, transform_indices = @transform_2, window_bounds = array<i64: 1, 256>}, {pipeline_mode = #tpu.pipeline_mode<synchronous>, transform_indices = @transform_3, window_bounds = array<i64: 256, 128>}, {pipeline_mode = #tpu.pipeline_mode<synchronous>, transform_indices = @transform_4, window_bounds = array<i64: 1, 128>}, {transform_indices = @transform_5, window_bounds = array<i64: 8, 128>}]} {
    %c0 = arith.constant 0 : index
    %c0_0 = arith.constant 0 : index
    %0 = vector.load %arg1[%c0, %c0_0] : memref<8x128xf32, #tpu.memory_space<vmem>>, vector<8x128xf32>
    %1 = arith.truncf %0 : vector<8x128xf32> to vector<8x128xbf16>
    %c0_1 = arith.constant 0 : index
    %c0_2 = arith.constant 0 : index
    %2 = vector.load %arg2[%c0_1, %c0_2] : memref<128x256xbf16, #tpu.memory_space<vmem>>, vector<128x256xbf16>
    %cst = arith.constant dense<0.000000e+00> : vector<8x256xf32>
    %3 = tpu.matmul %1, %2, %cst {dimension_numbers = #tpu.dot_dimension_numbers<[1], [0], [0], [1], [0, 0, 1, 1], [], []>} : vector<8x128xbf16>, vector<128x256xbf16>, vector<8x256xf32> -> vector<8x256xf32>
    %c0_3 = arith.constant 0 : index
    %c0_4 = arith.constant 0 : index
    %4 = vector.load %arg3[%c0_3, %c0_4] : memref<1x256xf32, #tpu.memory_space<vmem>>, vector<1x256xf32>
    %5 = vector.broadcast %4 : vector<1x256xf32> to vector<8x256xf32>
    %6 = arith.addf %3, %5 : vector<8x256xf32>
    %cst_5 = arith.constant 0.000000e+00 : f32
    %7 = vector.broadcast %cst_5 : f32 to vector<8x256xf32>
    %8 = arith.maximumf %6, %7 : vector<8x256xf32>
    %9 = arith.truncf %8 : vector<8x256xf32> to vector<8x256xbf16>
    %c0_6 = arith.constant 0 : index
    %c0_7 = arith.constant 0 : index
    %10 = vector.load %arg4[%c0_6, %c0_7] : memref<256x128xbf16, #tpu.memory_space<vmem>>, vector<256x128xbf16>
    %cst_8 = arith.constant dense<0.000000e+00> : vector<8x128xf32>
    %11 = tpu.matmul %9, %10, %cst_8 {dimension_numbers = #tpu.dot_dimension_numbers<[1], [0], [0], [1], [0, 0, 1, 1], [], []>} : vector<8x256xbf16>, vector<256x128xbf16>, vector<8x128xf32> -> vector<8x128xf32>
    %c0_9 = arith.constant 0 : index
    %c0_10 = arith.constant 0 : index
    %12 = vector.load %arg5[%c0_9, %c0_10] : memref<1x128xf32, #tpu.memory_space<vmem>>, vector<1x128xf32>
    %13 = vector.broadcast %12 : vector<1x128xf32> to vector<8x128xf32>
    %14 = arith.addf %11, %13 : vector<8x128xf32>
    %15 = arith.truncf %14 : vector<8x128xf32> to vector<8x128xbf16>
    %c0_11 = arith.constant 0 : index
    %c0_12 = arith.constant 0 : index
    %16 = vector.load %arg6[%c0_11, %c0_12] : memref<8x128xbf16, #tpu.memory_space<vmem>>, vector<8x128xbf16>
    tpu.vector_store %arg6[%c0_11, %c0_12], %15 {strides = array<i32>} : memref<8x128xbf16, #tpu.memory_space<vmem>>, vector<8x128xbf16>,
    return
  }
  func.func @transform_0(%arg0: i32) -> (i32, i32) {
    %c0_i32 = arith.constant 0 : i32
    %c0_i32_0 = arith.constant 0 : i32
    return %arg0, %c0_i32 : i32, i32
  }
  func.func @transform_1(%arg0: i32) -> (i32, i32) {
    %c0_i32 = arith.constant 0 : i32
    %c0_i32_0 = arith.constant 0 : i32
    %c0_i32_1 = arith.constant 0 : i32
    return %c0_i32, %c0_i32_0 : i32, i32
  }
  func.func @transform_2(%arg0: i32) -> (i32, i32) {
    %c0_i32 = arith.constant 0 : i32
    %c0_i32_0 = arith.constant 0 : i32
    %c0_i32_1 = arith.constant 0 : i32
    return %c0_i32, %c0_i32_0 : i32, i32
  }
  func.func @transform_3(%arg0: i32) -> (i32, i32) {
    %c0_i32 = arith.constant 0 : i32
    %c0_i32_0 = arith.constant 0 : i32
    %c0_i32_1 = arith.constant 0 : i32
    return %c0_i32, %c0_i32_0 : i32, i32
  }
  func.func @transform_4(%arg0: i32) -> (i32, i32) {
    %c0_i32 = arith.constant 0 : i32
    %c0_i32_0 = arith.constant 0 : i32
    %c0_i32_1 = arith.constant 0 : i32
    return %c0_i32, %c0_i32_0 : i32, i32
  }
  func.func @transform_5(%arg0: i32) -> (i32, i32) {
    %c0_i32 = arith.constant 0 : i32
    %c0_i32_0 = arith.constant 0 : i32
    return %arg0, %c0_i32 : i32, i32
  }
}

</mosaic_0001>

<bundles_post_ra>
// kernel: tpu_custom_call.1
= control target key start
LH: loop header
LB: loop body
LE: loop exit
PB: predicated region body
PF: predicated region fallthrough
CT: control target
= control target key end

     0   :  { %10 = vsyncpa [#allocation3], 0  ;;  %s656_s0 = inlined_call_operand.hbm [shape: f32[8,128], index: 0, kind: input, shape index: {}]   ;;  %s657_s1 = inlined_call_operand.hbm [shape: bf16[128,256], index: 1, kind: input, shape index: {}]   ;;  %s658_s2 = inlined_call_operand.vmem [shape: f32[1,256], index: 2, kind: input, shape index: {}]   ;;  %s659_s3 = inlined_call_operand.hbm [shape: bf16[256,128], index: 3, kind: input, shape index: {}]   ;;  %s660_s4 = inlined_call_operand.vmem [shape: f32[1,128], index: 4, kind: input, shape index: {}]   ;;  %s661_s5 = inlined_call_operand.hbm [shape: bf16[8,128], index: 5, kind: output, shape index: {}]  }
   0x1   :  { %11 = vsyncpa [#allocation6], 0 }
   0x2   :  { %12 = vsyncpa [#allocation4], 0  ;;  %s599_s18 = smov [#allocation5]  }
   0x3   :  { %s28_s19 = sshll.u32 %s599_s18, 4  ;;  %s29_s19 = int_to_ptr.vmem [resolvable:$true] %s28_s19 }
   0x4   :  { %s521_s20 = scalar_lea.vmem %s29_s19, 2048  ;;  %p526_p1 = scmp.lt.s32.totalorder %s29_s19, %s29_s19 }
   0x5   :  { %p522_p0 = scmp.ne.s32.totalorder %s29_s19, %s521_s20  ;;  %p527_p2 = scmp.lt.s32.totalorder %s521_s20, %s521_s20 }
   0x7   :  { %p528_p3 = por %p527_p2, %p526_p1 }
   0x9   :  { %p529_p4 = pnand %p528_p3, %p522_p0 }
   0xb   :  { %532 = shalt.err (!%p529_p4)
}
   0xc   :  { %s600_s21 = smov 128   ;;  %s601_s22 = smov 8  }
   0xd   :  { %34 = dma.hbm_to_vmem [thread:$0]  %s657_s1, 2048, %s29_s19, [#allocation6], %s600_s21, %s600_s21, %s601_s22  }
   0xe   :  { %s602_s25 = smov [#allocation2]   ;;  %s603_s27 = smov [#allocation7]  }
   0xf   :  { %s19_s26 = sshll.u32 %s602_s25, 4  ;;  %s42_s28 = sshll.u32 %s603_s27, 4  ;;  %s20_s26 = int_to_ptr.vmem [resolvable:$true] %s19_s26  ;;  %s43_s28 = int_to_ptr.vmem [resolvable:$true] %s42_s28 }
  0x10   :  { %s541_s29 = scalar_lea.vmem %s20_s26, 128  ;;  %p546_p6 = scmp.lt.s32.totalorder %s20_s26, %s20_s26 }
  0x11   :  { %p542_p5 = scmp.ne.s32.totalorder %s20_s26, %s541_s29  ;;  %p547_p7 = scmp.lt.s32.totalorder %s541_s29, %s541_s29 }
  0x13   :  { %p548_p8 = por %p547_p7, %p546_p6 }
  0x15   :  { %p549_p9 = pnand %p548_p8, %p542_p5 }
  0x17   :  { %552 = shalt.err (!%p549_p9)
}
  0x18   :  { %22 = dma.hbm_to_vmem [thread:$0]  %s656_s0, 128, %s20_s26, [#allocation3]  }
  0x19   :  { %s561_s7 = scalar_lea.vmem %s43_s28, 2048  ;;  %p566_p11 = scmp.lt.s32.totalorder %s43_s28, %s43_s28 }
  0x1a   :  { %p562_p10 = scmp.ne.s32.totalorder %s43_s28, %s561_s7  ;;  %p567_p12 = scmp.lt.s32.totalorder %s561_s7, %s561_s7 }
  0x1c   :  { %p568_p13 = por %p567_p12, %p566_p11 }
  0x1e   :  { %p569_p0 = pnand %p568_p13, %p562_p10 }
  0x20   :  { %572 = shalt.err (!%p569_p0)
}
  0x21   :  { %s604_s1 = smov 64   ;;  %s605_s8 = smov 4  }
  0x22   :  { %48 = dma.hbm_to_vmem [thread:$0]  %s659_s3, 2048, %s43_s28, [#allocation6], %s604_s1, %s604_s1, %s605_s8  }
  0x23   :  { %593 = dma.done.wait [#allocation3], 128  }
  0x24   :  { %594 = vsyncadd [#allocation3], 4294967168 }
  0x25   :  { %595 = dma.done.wait [#allocation6], 4096  }
  0x26   :  { %596 = vsyncadd [#allocation6], 4294963200  ;;  %v606_v0 = vmov 0   ;;  %v473_v1 = vld [vmem:[#allocation5 + $0x74] ss:$8 sps:$4 sm:$0xff]   ;;  %v501_v15 = vld [vmem:[#allocation7 + $0x68] sm:$0xff]   ;;  %v81_v35 = vlaneseq }
  0x27   :  { %203 = vmatprep.mubr.bf16.mxu0 %v606_v0  ;;  %v475_v2 = vld [vmem:[#allocation5 + $0x70] ss:$8 sps:$4 sm:$0xff]   ;;  %171 = vmatprep.subr.bf16.mxu0 %v473_v1  ;;  %v476_v3 = vld [vmem:[#allocation5 + $0x64] ss:$8 sps:$4 sm:$0xff]   ;;  %v478_v4 = vld [vmem:[#allocation5 + $0x60] ss:$8 sps:$4 sm:$0xff]  }
  0x28   :  { %172 = vmatpush1.bf16.msra.mxu0 %v475_v2  ;;  %v479_v5 = vld [vmem:[#allocation5 + $0x54] ss:$8 sps:$4 sm:$0xff]   ;;  %v481_v6 = vld [vmem:[#allocation5 + $0x50] ss:$8 sps:$4 sm:$0xff]   ;;  %v482_v7 = vld [vmem:[#allocation5 + $0x44] ss:$8 sps:$4 sm:$0xff]  }
  0x29   :  { %173 = vmatprep.subr.bf16.mxu0 %v476_v3  ;;  %v484_v8 = vld [vmem:[#allocation5 + $0x40] ss:$8 sps:$4 sm:$0xff]   ;;  %v485_v9 = vld [vmem:[#allocation5 + $0x34] ss:$8 sps:$4 sm:$0xff]   ;;  %v487_v12 = vld [vmem:[#allocation5 + $0x30] ss:$8 sps:$4 sm:$0xff]  }
  0x2a   :  { %v497_v10 = vld [vmem:[#allocation7 + $0x78] sm:$0xff]   ;;  %v499_v13 = vld [vmem:[#allocation7 + $0x70] sm:$0xff]   ;;  %v488_v16 = vld [vmem:[#allocation5 + $0x24] ss:$8 sps:$4 sm:$0xff]   ;;  %v82_v36 = vshrl.u32 %v81_v35, 7 }
  0x2b   :  { %v498_v11 = vld [vmem:[#allocation7 + $0x38] sm:$0xff]   ;;  %442 = vmatprep.subr.bf16.mxu1 %v497_v10  ;;  %v500_v14 = vld [vmem:[#allocation7 + $0x30] sm:$0xff]   ;;  %v490_v17 = vld [vmem:[#allocation5 + $0x20] ss:$8 sps:$4 sm:$0xff]  }
  0x2c   :  { %174 = vmatpush1.bf16.msra.mxu0 %v478_v4  ;;  %443 = vmatpush3.bf16.msra.mxu1 %v498_v11  ;;  %v502_v18 = vld [vmem:[#allocation7 + $0x28] sm:$0xff]   ;;  %v503_v19 = vld [vmem:[#allocation7 + $0x60] sm:$0xff]   ;;  %v491_v20 = vld [vmem:[#allocation5 + $0x14] ss:$8 sps:$4 sm:$0xff]   ;;  %v83_v37 = vsub.s32 0, %v82_v36  ;;  %v87_v39 = vsub.s32 1, %v82_v36 }
  0x2d   :  { %175 = vmatprep.subr.bf16.mxu0 %v479_v5  ;;  %444 = vmatprep.subr.bf16.mxu1 %v499_v13  ;;  %v493_v21 = vld [vmem:[#allocation5 + $0x10] ss:$8 sps:$4 sm:$0xff]   ;;  %v494_v22 = vld [vmem:[#allocation5 + $0x4] ss:$8 sps:$4 sm:$0xff]   ;;  %v496_v26 = vld [vmem:[#allocation5] ss:$8 sps:$4 sm:$0xff]  }
  0x2e   :  { %v504_v23 = vld [vmem:[#allocation7 + $0x20] sm:$0xff]   ;;  %v505_v24 = vld [vmem:[#allocation7 + $0x58] sm:$0xff]   ;;  %v507_v28 = vld [vmem:[#allocation7 + $0x50] sm:$0xff]  }
  0x2f   :  { %v506_v25 = vld [vmem:[#allocation7 + $0x18] sm:$0xff]   ;;  %v508_v30 = vld [vmem:[#allocation7 + $0x10] sm:$0xff]   ;;  %v509_v31 = vld [vmem:[#allocation7 + $0x48] sm:$0xff]  }
  0x30   :  { %176 = vmatpush1.bf16.msra.mxu0 %v481_v6  ;;  %445 = vmatpush3.bf16.msra.mxu1 %v500_v14  ;;  %v61_v27 = vld [vmem:[#allocation2] sm:$0xff]  ;;  %v510_v32 = vld [vmem:[#allocation7 + $0x8] sm:$0xff]   ;;  %v511_v33 = vld [vmem:[#allocation7 + $0x40] sm:$0xff]  }
  0x31   :  { %177 = vmatprep.subr.bf16.mxu0 %v482_v7  ;;  %446 = vmatprep.subr.bf16.mxu1 %v501_v15  ;;  %v62_v29 = vpack.c.bf16 %v61_v27, %v61_v27  ;;  %v512_v34 = vld [vmem:[#allocation7] sm:$0xff]   ;;  %v79_v38 = vld [vmem:[%s658_s2] sm:$0x3]  ;;  %s607_s2 = smov [#allocation8]  }
  0x32   :  { %v84_v40 = vrot.slane %v79_v38, %v83_v37  ;;  %v88_v41 = vrot.slane %v79_v38, %v87_v39  ;;  %v425_v53 = vld [vmem:[%s660_s4] ss:$0 sm:$0xff]  ;;  %s399_s13 = sshll.u32 %s607_s2, 4  ;;  %s400_s13 = int_to_ptr.vmem [resolvable:$true] %s399_s13 }
  0x33   :  { %s573_s14 = scalar_lea.vmem %s400_s13, 64  ;;  %p578_p2 = scmp.lt.s32.totalorder %s400_s13, %s400_s13 }
  0x34   :  { %178 = vmatpush1.bf16.msra.mxu0 %v484_v8  ;;  %447 = vmatpush3.bf16.msra.mxu1 %v502_v18  ;;  %p574_p1 = scmp.ne.s32.totalorder %s400_s13, %s573_s14  ;;  %p579_p3 = scmp.lt.s32.totalorder %s573_s14, %s573_s14 }
  0x35   :  { %179 = vmatprep.subr.bf16.mxu0 %v485_v9  ;;  %448 = vmatprep.subr.bf16.mxu1 %v503_v19 }
  0x36   :  { %p580_p4 = por %p579_p3, %p578_p2 }
  0x38   :  { %180 = vmatpush1.bf16.msra.mxu0 %v487_v12  ;;  %449 = vmatpush3.bf16.msra.mxu1 %v504_v23  ;;  %p581_p5 = pnand %p580_p4, %p574_p1 }
  0x39   :  { %181 = vmatprep.subr.bf16.mxu0 %v488_v16  ;;  %450 = vmatprep.subr.bf16.mxu1 %v505_v24 }
  0x3c   :  { %182 = vmatpush1.bf16.msra.mxu0 %v490_v17  ;;  %451 = vmatpush3.bf16.msra.mxu1 %v506_v25 }
  0x3d   :  { %183 = vmatprep.subr.bf16.mxu0 %v491_v20  ;;  %452 = vmatprep.subr.bf16.mxu1 %v507_v28 }
  0x40   :  { %184 = vmatpush1.bf16.msra.mxu0 %v493_v21  ;;  %453 = vmatpush3.bf16.msra.mxu1 %v508_v30 }
  0x41   :  { %185 = vmatprep.subr.bf16.mxu0 %v494_v22  ;;  %454 = vmatprep.subr.bf16.mxu1 %v509_v31 }
  0x44   :  { %186 = vmatpush1.bf16.msra.mxu0 %v496_v26  ;;  %455 = vmatpush3.bf16.msra.mxu1 %v510_v32 }
  0x45   :  { %456 = vmatprep.subr.bf16.mxu1 %v511_v33 }
  0x47   :  { %204 = vmatmul.mubr.bf16.vlgmr.msra.gmra.mxu0 %v62_v29 }
  0x48   :  { %457 = vmatpush3.bf16.msra.mxu1 %v512_v34 }
 0x107   :  { %v205_v42 = vpop.f32.mrf.mxu0 }
 0x108   :  { %v206_v43 = vadd.f32 %v205_v42, %v84_v40 }
 0x109   :  { %v207_v44 = vpop.f32.mrf.mxu0 }
 0x10a   :  { %v208_v45 = vadd.f32 %v207_v44, %v88_v41  ;;  %v212_v46 = vmax.f32 %v206_v43, 0.0 }
 0x10b   :  { %v209_v47 = vpop.f32.mrf.mxu0 }
 0x10c   :  { %v213_v48 = vmax.f32 %v208_v45, 0.0  ;;  %v214_v51 = vpack.c.bf16 %v212_v46, %v212_v46 }
 0x10d   :  { %v210_v49 = vpop.f32.mrf.mxu0 }
 0x10e   :  { %v215_v50 = vpack.c.bf16 %v213_v48, %v213_v48 }
 0x110   :  { %383 = vmatprep.mubr.bf16.mxu1 %v215_v50 }
 0x111   :  { %384 = vmatmul.mubr.bf16.vlgmr.msra.gmra.mxu1 %v214_v51 }
 0x1d1   :  { %v458_v52 = vpop.f32.mrf.mxu1 }
 0x1d3   :  { %v459_v54 = vpop.f32.mrf.mxu1 }
 0x1d4   :  { %v460_v55 = vadd.f32 %v459_v54, %v458_v52 }
 0x1d5   :  { %v461_v56 = vpop.f32.mrf.mxu1 }
 0x1d6   :  { %v386_v57 = vadd.f32 %v460_v55, %v425_v53 }
 0x1d7   :  { %v462_v58 = vpop.f32.mrf.mxu1 }
 0x1d8   :  { %v391_v59 = vpack.c.bf16 %v386_v57, %v386_v57 }
 0x1da   :  { %392 = vst [vmem:[#allocation8] sm:$0xf] %v391_v59 }
 0x1db   :  { %584 = shalt.err (!%p581_p5)
}
 0x1dc   :  { %402 = dma.vmem_to_hbm [thread:$0]  %s400_s13, 64, %s661_s5, [#allocation4]  }
 0x1dd   :  { %597 = dma.done.wait [#allocation4], 64  }
 0x1de   :  { %598 = vsyncadd [#allocation4], 4294967232 }
 0x1df   :  { %406 = vsyncpa [#allocation3], 1 }
 0x1e0   :  { %407 = vsyncpa [#allocation6], 1 }
 0x1e1   :  { %408 = vsyncpa [#allocation4], 1 }

</bundles_post_ra>
